<compile_context>
chip_gen: v5e
topology: v5e:2x2
jax: 0.10.0
libtpu: 0.0.40
codegen_flags: <defaults>
</compile_context>

<pallas_src>
import jax
import jax.numpy as jnp
from jax.experimental import pallas as pl
from jax.experimental.pallas import tpu as pltpu


def _mlp_kernel(x_ref, w1_ref, b1_ref, w2_ref, b2_ref, w3_ref, b3_ref, o_ref):
    # Transposed layout: activations are [features, TB]; batch is the lane axis.
    x = x_ref[...]                                              # [10, TB]

    # fc1 + ReLU
    h1 = jnp.dot(w1_ref[...], x, preferred_element_type=jnp.float32)
    h1 = jnp.maximum(h1 + b1_ref[...], 0.0)                     # [45, TB] f32

    # fc2 + ReLU (dropout p=0.2 is identity at inference time)
    # TODO(synk): training-mode dropout would need pltpu.prng_* masking.
    h2 = jnp.dot(w2_ref[...], h1.astype(w2_ref.dtype),
                 preferred_element_type=jnp.float32)
    h2 = jnp.maximum(h2 + b2_ref[...], 0.0)                     # [30, TB] f32

    # fc3 + ReLU
    h3 = jnp.dot(w3_ref[...], h2.astype(w3_ref.dtype),
                 preferred_element_type=jnp.float32)
    h3 = jnp.maximum(h3 + b3_ref[...], 0.0)                     # [1, TB] f32

    o_ref[...] = h3.astype(o_ref.dtype)                         # lane-dense store


def regressor_forward(x, params, *, block_batch=1024, compute_dtype=jnp.float32):
    """x: [B, 10] float32 -> [B, 1] float32.

    Weights are PyTorch-native [out_features, in_features]; biases [out, 1].
    """
    w1, b1, w2, b2, w3, b3 = params
    B = x.shape[0]

    # Batch tile: multiple of 128 (it becomes the lane axis).  Cap it so tiny
    # batches don't over-pad, but large batches get big, pipeline-friendly tiles.
    tb = max(128, (int(block_batch) // 128) * 128)
    tb = min(tb, pl.cdiv(B, 128) * 128)
    b_pad = pl.cdiv(B, tb) * tb
    n_tiles = b_pad // tb

    # One-time layout plumbing in XLA: transpose so batch is the lane axis and
    # zero-pad to a whole number of tiles (padded columns are harmless).
    x_t = jnp.pad(x.T.astype(compute_dtype), ((0, 0), (0, b_pad - B)))

    w1c, w2c, w3c = (w.astype(compute_dtype) for w in (w1, w2, w3))
    # Biases stay f32: bias-add / ReLU run on the f32 MXU accumulator.
    b1c, b2c, b3c = (b.astype(jnp.float32) for b in (b1, b2, b3))

    # Full-array blocks with a constant index_map -> resident across grid steps.
    resident = lambda a: pl.BlockSpec(a.shape, lambda i: (0,) * a.ndim)

    out_t = pl.pallas_call(
        _mlp_kernel,
        out_shape=jax.ShapeDtypeStruct((1, b_pad), jnp.float32),
        grid=(n_tiles,),
        in_specs=[
            pl.BlockSpec((10, tb), lambda i: (0, i)),   # x tile (auto-pipelined)
            resident(w1c), resident(b1c),
            resident(w2c), resident(b2c),
            resident(w3c), resident(b3c),
        ],
        out_specs=pl.BlockSpec((1, tb), lambda i: (0, i)),   # lane-dense output
        compiler_params=pltpu.CompilerParams(
            dimension_semantics=("parallel",),           # shard across v7x's 2 TCs
            vmem_limit_bytes=32 * 1024 * 1024,           # safe within v7x's 64 MiB
        ),
    )(x_t, w1c, b1c, w2c, b2c, w3c, b3c)

    # [1, b_pad] -> [B, 1]: pure reshape + slice (no transpose needed).
    return out_t.reshape(b_pad, 1)[:B]


def init_params(key):
    """PyTorch-style init; weights stored [out_features, in_features]."""
    ks = jax.random.split(key, 6)

    def linear(kw, kb, fan_in, fan_out):
        bound = float(fan_in) ** -0.5
        w = jax.random.uniform(kw, (fan_out, fan_in), jnp.float32, -bound, bound)
        b = jax.random.uniform(kb, (fan_out, 1), jnp.float32, -bound, bound)
        return w, b

    w1, b1 = linear(ks[0], ks[1], 10, 45)
    w2, b2 = linear(ks[2], ks[3], 45, 30)
    w3, b3 = linear(ks[4], ks[5], 30, 1)
    return (w1, b1, w2, b2, w3, b3)


def regressor_ref(x, params):
    """Pure-JAX reference (eval mode: dropout = identity)."""
    w1, b1, w2, b2, w3, b3 = params
    h = jnp.maximum(x @ w1.T + b1.T, 0.0)
    h = jnp.maximum(h @ w2.T + b2.T, 0.0)
    return jnp.maximum(h @ w3.T + b3.T, 0.0)


if __name__ == "__main__":
    key = jax.random.PRNGKey(0)
    kx, kp = jax.random.split(key)
    params = init_params(kp)

    # Small shape consistent with the module (feature dim = 10).
    batch = 8
    x = jax.random.normal(kx, (batch, 10), jnp.float32)

    out = jax.block_until_ready(regressor_forward(x, params))
    ref = regressor_ref(x, params)
    assert out.shape == (batch, 1), out.shape
    assert jnp.allclose(out, ref, atol=1e-5, rtol=1e-5)

    # Multi-tile grid + batch-padding path (300 rows, 128-row tiles -> 3 steps).
    batch2 = 300
    x2 = jax.random.normal(kx, (batch2, 10), jnp.float32)
    out2 = jax.block_until_ready(regressor_forward(x2, params, block_batch=128))
    ref2 = regressor_ref(x2, params)
    assert out2.shape == (batch2, 1), out2.shape
    assert jnp.allclose(out2, ref2, atol=1e-5, rtol=1e-5)

    # bf16 bandwidth-optimized path (looser tolerance due to bf16 inputs).
    out3 = jax.block_until_ready(
        regressor_forward(x2, params, block_batch=256, compute_dtype=jnp.bfloat16))
    assert jnp.allclose(out3, ref2, atol=5e-2, rtol=5e-2)

    print("KERNEL_OK")
</pallas_src>

<mosaic_0001>
module attributes {stable_mosaic.version = 11 : i64} {
  func.func @_mlp_kernel(%arg0: i32, %arg1: memref<10x128xf32, #tpu.memory_space<vmem>>, %arg2: memref<45x10xf32, #tpu.memory_space<vmem>>, %arg3: memref<45x1xf32, #tpu.memory_space<vmem>>, %arg4: memref<30x45xf32, #tpu.memory_space<vmem>>, %arg5: memref<30x1xf32, #tpu.memory_space<vmem>>, %arg6: memref<1x30xf32, #tpu.memory_space<vmem>>, %arg7: memref<1x1xf32, #tpu.memory_space<vmem>>, %arg8: memref<1x128xf32, #tpu.memory_space<vmem>>) attributes {dimension_semantics = [#tpu.dimension_semantics<parallel>], iteration_bounds = array<i64: 1>, scalar_prefetch = 0 : i64, scratch_operands = 0 : i64, tpu.core_type = #tpu.core_type<tc>, window_params = [{transform_indices = @transform_0, window_bounds = array<i64: 10, 128>}, {pipeline_mode = #tpu.pipeline_mode<synchronous>, transform_indices = @transform_1, window_bounds = array<i64: 45, 10>}, {pipeline_mode = #tpu.pipeline_mode<synchronous>, transform_indices = @transform_2, window_bounds = array<i64: 45, 1>}, {pipeline_mode = #tpu.pipeline_mode<synchronous>, transform_indices = @transform_3, window_bounds = array<i64: 30, 45>}, {pipeline_mode = #tpu.pipeline_mode<synchronous>, transform_indices = @transform_4, window_bounds = array<i64: 30, 1>}, {pipeline_mode = #tpu.pipeline_mode<synchronous>, transform_indices = @transform_5, window_bounds = array<i64: 1, 30>}, {pipeline_mode = #tpu.pipeline_mode<synchronous>, transform_indices = @transform_6, window_bounds = array<i64: 1, 1>}, {transform_indices = @transform_7, window_bounds = array<i64: 1, 128>}]} {
    %c0 = arith.constant 0 : index
    %c0_0 = arith.constant 0 : index
    %0 = vector.load %arg1[%c0, %c0_0] : memref<10x128xf32, #tpu.memory_space<vmem>>, vector<10x128xf32>
    %c0_1 = arith.constant 0 : index
    %c0_2 = arith.constant 0 : index
    %1 = vector.load %arg2[%c0_1, %c0_2] : memref<45x10xf32, #tpu.memory_space<vmem>>, vector<45x10xf32>
    %cst = arith.constant dense<0.000000e+00> : vector<45x128xf32>
    %2 = tpu.matmul %1, %0, %cst {dimension_numbers = #tpu.dot_dimension_numbers<[1], [0], [0], [1], [0, 0, 1, 1], [], []>} : vector<45x10xf32>, vector<10x128xf32>, vector<45x128xf32> -> vector<45x128xf32>
    %c0_3 = arith.constant 0 : index
    %c0_4 = arith.constant 0 : index
    %3 = vector.load %arg3[%c0_3, %c0_4] : memref<45x1xf32, #tpu.memory_space<vmem>>, vector<45x1xf32>
    %4 = vector.broadcast %3 : vector<45x1xf32> to vector<45x128xf32>
    %5 = arith.addf %2, %4 : vector<45x128xf32>
    %cst_5 = arith.constant 0.000000e+00 : f32
    %6 = vector.broadcast %cst_5 : f32 to vector<45x128xf32>
    %7 = arith.maximumf %5, %6 : vector<45x128xf32>
    %c0_6 = arith.constant 0 : index
    %c0_7 = arith.constant 0 : index
    %8 = vector.load %arg4[%c0_6, %c0_7] : memref<30x45xf32, #tpu.memory_space<vmem>>, vector<30x45xf32>
    %cst_8 = arith.constant dense<0.000000e+00> : vector<30x128xf32>
    %9 = tpu.matmul %8, %7, %cst_8 {dimension_numbers = #tpu.dot_dimension_numbers<[1], [0], [0], [1], [0, 0, 1, 1], [], []>} : vector<30x45xf32>, vector<45x128xf32>, vector<30x128xf32> -> vector<30x128xf32>
    %c0_9 = arith.constant 0 : index
    %c0_10 = arith.constant 0 : index
    %10 = vector.load %arg5[%c0_9, %c0_10] : memref<30x1xf32, #tpu.memory_space<vmem>>, vector<30x1xf32>
    %11 = vector.broadcast %10 : vector<30x1xf32> to vector<30x128xf32>
    %12 = arith.addf %9, %11 : vector<30x128xf32>
    %cst_11 = arith.constant 0.000000e+00 : f32
    %13 = vector.broadcast %cst_11 : f32 to vector<30x128xf32>
    %14 = arith.maximumf %12, %13 : vector<30x128xf32>
    %c0_12 = arith.constant 0 : index
    %c0_13 = arith.constant 0 : index
    %15 = vector.load %arg6[%c0_12, %c0_13] : memref<1x30xf32, #tpu.memory_space<vmem>>, vector<1x30xf32>
    %cst_14 = arith.constant dense<0.000000e+00> : vector<1x128xf32>
    %16 = tpu.matmul %15, %14, %cst_14 {dimension_numbers = #tpu.dot_dimension_numbers<[1], [0], [0], [1], [0, 0, 1, 1], [], []>} : vector<1x30xf32>, vector<30x128xf32>, vector<1x128xf32> -> vector<1x128xf32>
    %c0_15 = arith.constant 0 : index
    %c0_16 = arith.constant 0 : index
    %17 = vector.load %arg7[%c0_15, %c0_16] : memref<1x1xf32, #tpu.memory_space<vmem>>, vector<1x1xf32>
    %18 = vector.broadcast %17 : vector<1x1xf32> to vector<1x128xf32>
    %19 = arith.addf %16, %18 : vector<1x128xf32>
    %cst_17 = arith.constant 0.000000e+00 : f32
    %20 = vector.broadcast %cst_17 : f32 to vector<1x128xf32>
    %21 = arith.maximumf %19, %20 : vector<1x128xf32>
    %c0_18 = arith.constant 0 : index
    %c0_19 = arith.constant 0 : index
    %22 = vector.load %arg8[%c0_18, %c0_19] : memref<1x128xf32, #tpu.memory_space<vmem>>, vector<1x128xf32>
    tpu.vector_store %arg8[%c0_18, %c0_19], %21 {strides = array<i32>} : memref<1x128xf32, #tpu.memory_space<vmem>>, vector<1x128xf32>,
    return
  }
  func.func @transform_0(%arg0: i32) -> (i32, i32) {
    %c0_i32 = arith.constant 0 : i32
    %c0_i32_0 = arith.constant 0 : i32
    return %c0_i32, %arg0 : i32, i32
  }
  func.func @transform_1(%arg0: i32) -> (i32, i32) {
    %c0_i32 = arith.constant 0 : i32
    %c0_i32_0 = arith.constant 0 : i32
    %c0_i32_1 = arith.constant 0 : i32
    return %c0_i32, %c0_i32_0 : i32, i32
  }
  func.func @transform_2(%arg0: i32) -> (i32, i32) {
    %c0_i32 = arith.constant 0 : i32
    %c0_i32_0 = arith.constant 0 : i32
    %c0_i32_1 = arith.constant 0 : i32
    return %c0_i32, %c0_i32_0 : i32, i32
  }
  func.func @transform_3(%arg0: i32) -> (i32, i32) {
    %c0_i32 = arith.constant 0 : i32
    %c0_i32_0 = arith.constant 0 : i32
    %c0_i32_1 = arith.constant 0 : i32
    return %c0_i32, %c0_i32_0 : i32, i32
  }
  func.func @transform_4(%arg0: i32) -> (i32, i32) {
    %c0_i32 = arith.constant 0 : i32
    %c0_i32_0 = arith.constant 0 : i32
    %c0_i32_1 = arith.constant 0 : i32
    return %c0_i32, %c0_i32_0 : i32, i32
  }
  func.func @transform_5(%arg0: i32) -> (i32, i32) {
    %c0_i32 = arith.constant 0 : i32
    %c0_i32_0 = arith.constant 0 : i32
    %c0_i32_1 = arith.constant 0 : i32
    return %c0_i32, %c0_i32_0 : i32, i32
  }
  func.func @transform_6(%arg0: i32) -> (i32, i32) {
    %c0_i32 = arith.constant 0 : i32
    %c0_i32_0 = arith.constant 0 : i32
    %c0_i32_1 = arith.constant 0 : i32
    return %c0_i32, %c0_i32_0 : i32, i32
  }
  func.func @transform_7(%arg0: i32) -> (i32, i32) {
    %c0_i32 = arith.constant 0 : i32
    %c0_i32_0 = arith.constant 0 : i32
    return %c0_i32, %arg0 : i32, i32
  }
}

</mosaic_0001>

<bundles_post_ra>
// kernel: tpu_custom_call.1
= control target key start
LH: loop header
LB: loop body
LE: loop exit
PB: predicated region body
PF: predicated region fallthrough
CT: control target
= control target key end

     0   :  { %s445_s0 = inlined_call_operand.vmem [shape: f32[10,128], index: 0, kind: input, shape index: {}]   ;;  %s446_s1 = inlined_call_operand.vmem [shape: f32[45,10], index: 1, kind: input, shape index: {}]   ;;  %s447_s2 = inlined_call_operand.vmem [shape: f32[45,1], index: 2, kind: input, shape index: {}]   ;;  %s448_s3 = inlined_call_operand.vmem [shape: f32[30,45], index: 3, kind: input, shape index: {}]   ;;  %s449_s4 = inlined_call_operand.vmem [shape: f32[30,1], index: 4, kind: input, shape index: {}]   ;;  %s450_s5 = inlined_call_operand.vmem [shape: f32[1,30], index: 5, kind: input, shape index: {}]   ;;  %s451_s6 = inlined_call_operand.<no memory space> [shape: f32[1,1], index: 6, kind: input, shape index: {}]   ;;  %s452_s7 = inlined_call_operand.hbm [shape: f32[1,128], index: 7, kind: output, shape index: {}]  }
   0x1   :  { %v12_v0 = vstv %s451_s6 }
   0x2   :  { %13 = vst [vmem:[#allocation2] sm:$0x1] %v12_v0 }
   0x3   :  { %v30_v1 = vld [vmem:[%s445_s0 + $0x8] sm:$0x3]  ;;  %vm92_vm0 = vcmask 1041408   ;;  %v29_v2 = vld [vmem:[%s445_s0] sm:$0xff]  ;;  %vm73_vm1 = vcmask 80896   ;;  %v322_v5 = vmov 0  }
   0x4   :  { %269 = vmatpush.msk.msra.mxu0 %vm92_vm0, %v30_v1  ;;  %283 = vmatpush.msk.msra.mxu3 %vm92_vm0, %v30_v1  ;;  %v31_v3 = vld [vmem:[%s446_s1] sm:$0xff]  ;;  %v42_v6 = vld [vmem:[%s447_s2 + $0x28] sm:$0x1f]  ;;  %v40_v7 = vld [vmem:[%s447_s2 + $0x18] sm:$0xff] }
   0x5   :  { %v35_v4 = vld [vmem:[%s446_s1 + $0x20] sm:$0xff]  ;;  %293 = vset.pattern.permute.xlu0 %v322_v5  ;;  %294 = vset.pattern.permute.xlu1 %v322_v5  ;;  %v38_v8 = vld [vmem:[%s447_s2 + $0x8] sm:$0xff] }
   0x6   :  { %111 = vmatpush.msra.mxu0 %v29_v2  ;;  %284 = vmatpush.msra.mxu3 %v29_v2 }
   0x7   :  { %270 = vmatmul.msk.f32.vlgmr.msra.gmra.mxu0 %vm73_vm1, %v31_v3  ;;  %274 = vmatmul.msk.f32.vlgmr.msra.gmra.mxu3 %vm73_vm1, %v35_v4 }
   0x8   :  { %70 = vperm.xlu0 %293, %v42_v6   ;;  %60 = vperm.xlu1 %294, %v40_v7  }
   0x9   :  { %295 = vset.pattern.permute.xlu2 %v322_v5 }
   0xa   :  { %14 = vsyncpa [#allocation4], 0  ;;  %50 = vperm.xlu2 %295, %v38_v8   ;;  %v32_v9 = vld [vmem:[%s446_s1 + $0x8] sm:$0xff]  ;;  %v41_v11 = vld [vmem:[%s447_s2 + $0x20] sm:$0xff]  ;;  %vm178_vm2 = vcmask 1044480   ;;  %vm165_vm3 = vcmask 367616  }
   0xb   :  { %v36_v10 = vld [vmem:[%s446_s1 + $0x28] sm:$0x1f]  ;;  %v39_v12 = vld [vmem:[%s447_s2 + $0x10] sm:$0xff]  ;;  %v37_v13 = vld [vmem:[%s447_s2] sm:$0xff]  ;;  %vm227_vm4 = vcmask 1045504   ;;  %vm223_vm5 = vcmask 244736  }
   0xc   :  { %v33_v14 = vld [vmem:[%s446_s1 + $0x10] sm:$0xff]  ;;  %v144_v15 = vld [vmem:[%s449_s4 + $0x18] sm:$0x3f]  ;;  %v142_v17 = vld [vmem:[%s449_s4 + $0x8] sm:$0xff]  ;;  %s323_s18 = smov [#allocation3]   ;;  %s260_s22 = sshll.u32 %s452_s7, 4  ;;  %s261_s22 = int_to_ptr.hbm [resolvable:$true] %s260_s22 }
   0xd   :  { %v143_v16 = vld [vmem:[%s449_s4 + $0x10] sm:$0xff]  ;;  %v34_v18 = vld [vmem:[%s446_s1 + $0x18] sm:$0xff]  ;;  %v141_v19 = vld [vmem:[%s449_s4] sm:$0xff]  ;;  %s258_s19 = sshll.u32 %s323_s18, 4  ;;  %s259_s19 = int_to_ptr.vmem [resolvable:$true] %s258_s19 }
   0xe   :  { %v216_v20 = vld [vmem:[#allocation2] sm:$0x1]  ;;  %v140_v46 = vld [vmem:[%s448_s3 + $0x18] sm:$0x3f]  ;;  %v138_v47 = vld [vmem:[%s448_s3 + $0x8] sm:$0xff] }
   0xf   :  { %271 = vmatmul.msk.f32.gmra.mxu0 %vm73_vm1, %v32_v9  ;;  %275 = vmatmul.msk.f32.gmra.mxu3 %vm73_vm1, %v36_v10  ;;  %v137_v45 = vld [vmem:[%s448_s3] sm:$0xff]  ;;  %v139_v48 = vld [vmem:[%s448_s3 + $0x10] sm:$0xff] }
  0x10   :  { %65 = vperm.xlu0 %293, %v41_v11   ;;  %55 = vperm.xlu1 %294, %v39_v12   ;;  %v215_v1 = vld [vmem:[%s450_s5] sm:$0x1] }
  0x12   :  { %45 = vperm.xlu2 %295, %v37_v13  }
  0x17   :  { %272 = vmatmul.msk.f32.gmra.mxu0 %vm73_vm1, %v33_v14 }
  0x18   :  { %162 = vperm.xlu0 %293, %v144_v15   ;;  %157 = vperm.xlu1 %294, %v143_v16  }
  0x1a   :  { %152 = vperm.xlu2 %295, %v142_v17  }
  0x1f   :  { %273 = vmatmul.msk.f32.gmra.mxu0 %vm73_vm1, %v34_v18 }
  0x20   :  { %147 = vperm.xlu0 %293, %v141_v19   ;;  %219 = vperm.xlu1 %294, %v216_v20  }
  0x64   :  { %v51_v30 = vpop.permute.xlu2 %50 }
  0x6c   :  { %v46_v38 = vpop.permute.xlu2 %45 }
  0x74   :  { %v153_v55 = vpop.permute.xlu2 %152 }
  0x7a   :  { %v71_v22 = vpop.permute.xlu0 %70  ;;  %v61_v25 = vpop.permute.xlu1 %60 }
  0x82   :  { %v66_v26 = vpop.permute.xlu0 %65  ;;  %v56_v34 = vpop.permute.xlu1 %55 }
  0x84   :  { %v113_v21 = vpop.f32.mrf.mxu0 }
  0x85   :  { %v114_v41 = vadd.f32 %v113_v21, %v46_v38 }
  0x87   :  { %v131_v44 = vmax.f32 %v114_v41, 0.0 }
  0x8a   :  { %v125_v23 = vpop.f32.mrf.mxu3  ;;  %v163_v50 = vpop.permute.xlu0 %162 }
  0x8b   :  { %v126_v28 = vadd.f32 %v125_v23, %v66_v26  ;;  %v158_v56 = vpop.permute.xlu1 %157 }
  0x8c   :  { %v116_v24 = vpop.f32.mrf.mxu0 }
  0x8d   :  { %v135_v33 = vmax.f32 %v126_v28, 0.0  ;;  %v117_v39 = vadd.f32 %v116_v24, %v51_v30 }
  0x8f   :  { %v132_v43 = vmax.f32 %v117_v39, 0.0 }
  0x92   :  { %v128_v27 = vpop.f32.mrf.mxu3  ;;  %v148_v60 = vpop.permute.xlu0 %147 }
  0x93   :  { %v129_v29 = vadd.f32 %v128_v27, %v71_v22  ;;  %v220_v2 = vpop.permute.xlu1 %219 }
  0x94   :  { %v119_v31 = vpop.f32.mrf.mxu0  ;;  %v222_v3 = vperm.slane %v220_v2, 0 }
  0x95   :  { %v136_v32 = vmax.f32 %v129_v29, 0.0  ;;  %v120_v36 = vadd.f32 %v119_v31, %v56_v34 }
  0x97   :  { %276 = vmatpush.msk.msra.mxu1 %vm178_vm2, %v136_v32  ;;  %285 = vmatpush.msk.msra.mxu2 %vm178_vm2, %v136_v32  ;;  %v133_v42 = vmax.f32 %v120_v36, 0.0 }
  0x99   :  { %193 = vmatpush.msra.mxu1 %v135_v33  ;;  %286 = vmatpush.msra.mxu2 %v135_v33 }
  0x9c   :  { %v122_v35 = vpop.f32.mrf.mxu0 }
  0x9d   :  { %v123_v37 = vadd.f32 %v122_v35, %v61_v25 }
  0x9f   :  { %v134_v40 = vmax.f32 %v123_v37, 0.0 }
  0xa1   :  { %194 = vmatpush.msra.mxu1 %v134_v40  ;;  %287 = vmatpush.msra.mxu2 %v134_v40 }
  0xa3   :  { %195 = vmatpush.msra.mxu1 %v133_v42  ;;  %288 = vmatpush.msra.mxu2 %v133_v42 }
  0xa5   :  { %196 = vmatpush.msra.mxu1 %v132_v43  ;;  %289 = vmatpush.msra.mxu2 %v132_v43 }
  0xa7   :  { %197 = vmatpush.msra.mxu1 %v131_v44  ;;  %290 = vmatpush.msra.mxu2 %v131_v44 }
  0xa8   :  { %277 = vmatmul.msk.f32.vlgmr.msra.gmra.mxu1 %vm165_vm3, %v137_v45  ;;  %280 = vmatmul.msk.f32.vlgmr.msra.gmra.mxu2 %vm165_vm3, %v140_v46 }
  0xb0   :  { %278 = vmatmul.msk.f32.gmra.mxu1 %vm165_vm3, %v138_v47 }
  0xb8   :  { %279 = vmatmul.msk.f32.gmra.mxu1 %vm165_vm3, %v139_v48 }
 0x125   :  { %v199_v49 = vpop.f32.mrf.mxu1 }
 0x126   :  { %v200_v61 = vadd.f32 %v199_v49, %v148_v60 }
 0x128   :  { %v211_v0 = vmax.f32 %v200_v61, 0.0 }
 0x12b   :  { %v208_v51 = vpop.f32.mrf.mxu2 }
 0x12c   :  { %v209_v52 = vadd.f32 %v208_v51, %v163_v50 }
 0x12d   :  { %v202_v53 = vpop.f32.mrf.mxu1 }
 0x12e   :  { %v214_v54 = vmax.f32 %v209_v52, 0.0  ;;  %v203_v58 = vadd.f32 %v202_v53, %v153_v55 }
 0x130   :  { %281 = vmatpush.msk.msrb.mxu2 %vm227_vm4, %v214_v54  ;;  %v212_v63 = vmax.f32 %v203_v58, 0.0 }
 0x135   :  { %v205_v57 = vpop.f32.mrf.mxu1 }
 0x136   :  { %v206_v59 = vadd.f32 %v205_v57, %v158_v56 }
 0x138   :  { %v213_v62 = vmax.f32 %v206_v59, 0.0 }
 0x13a   :  { %244 = vmatpush.msrb.mxu2 %v213_v62 }
 0x13c   :  { %245 = vmatpush.msrb.mxu2 %v212_v63 }
 0x13e   :  { %246 = vmatpush.msrb.mxu2 %v211_v0 }
 0x13f   :  { %282 = vmatmul.msk.f32.vlgmr.msrb.gmra.mxu2 %vm223_vm5, %v215_v1 }
 0x1c2   :  { %v248_v4 = vpop.f32.mrf.mxu2 }
 0x1c3   :  { %v249_v5 = vadd.f32 %v248_v4, %v222_v3 }
 0x1c5   :  { %v251_v6 = vmax.f32 %v249_v5, 0.0 }
 0x1c7   :  { %252 = vst [vmem:[#allocation3] sm:$0x1] %v251_v6 }
 0x1c8   :  { %263 = dma.vmem_to_hbm [thread:$0]  %s259_s19, 16, %s261_s22, [#allocation4]  }
 0x1c9   :  { %320 = dma.done.wait [#allocation4], 16  }
 0x1ca   :  { %321 = vsyncadd [#allocation4], 4294967280 }
 0x1cb   :  { %268 = vsyncpa [#allocation4], 1 }

</bundles_post_ra>
